<compile_context>
chip_gen: v7x
topology: tpu7x:2x2x1
jax: 0.10.0
libtpu: 0.0.40
codegen_flags: <defaults>
</compile_context>

<pallas_src>
import jax
import jax.numpy as jnp
from jax.experimental import pallas as pl
from jax.experimental.pallas import tpu as pltpu


_LANES = 512           # lane width of the 2-D edge layout (multiple of 128)
_MAX_TILE_ROWS = 1024  # up to 1024*512 edges per block -> 2 MiB per f32 stream


def _apply_coef_kernel(coef_ref, ew_ref, out_ref):
    # out_e = c_e * w_e — pure VPU streaming multiply, memory-bound.
    out_ref[...] = coef_ref[...] * ew_ref[...]


def _round_up(x, m):
    return -(-x // m) * m


def edge_weight_norm(src, dst, edge_weight, num_nodes, norm='both', eps=0.0,
                     return_padded=False):
    """Pallas implementation of EdgeWeightNorm.forward."""
    if edge_weight.ndim != 1:
        raise ValueError("Only scalar (1-D) edge weights are supported.")
    if norm not in ('both', 'right', 'none'):
        raise ValueError(f"Unknown norm: {norm}")

    ew = edge_weight.astype(jnp.float32)
    if norm == 'none':
        return ew  # c_e == 1, identity

    E = int(ew.shape[0])
    src = src.astype(jnp.int32)
    dst = dst.astype(jnp.int32)

    # ---- edge tiling: lane-dense (rows_pad, _LANES) layout -------------------
    rows = max(1, -(-E // _LANES))
    tile_rows = min(_MAX_TILE_ROWS, _round_up(rows, 8))
    # v7x megacore: give the ("parallel",) axis >= 2 grid steps for medium
    # graphs so both TensorCores get work (irrelevant on single-TC v5e/v6e).
    if _round_up(rows, tile_rows) // tile_rows < 2 and rows > 8:
        tile_rows = max(8, _round_up(-(-rows // 2), 8))
    rows_pad = _round_up(rows, tile_rows)
    grid = (rows_pad // tile_rows,)
    total = rows_pad * _LANES
    pad = total - E

    # ---- O(N) node coefficients in XLA; O(E) gather fused with padding -------
    # TODO(synk): the scatter-add (segment_sum) and the per-edge index gather
    # stay in XLA — there is no dense-block Pallas equivalent short of O(N*E)
    # one-hot matmuls, which the perf review rules out.
    deg_in = jax.ops.segment_sum(ew, dst, num_segments=int(num_nodes))
    dst_pad = jnp.pad(dst, (0, pad))  # padded slots reference node 0
    if norm == 'both':
        deg_out = jax.ops.segment_sum(ew, src, num_segments=int(num_nodes))
        cs = jax.lax.rsqrt(deg_out + eps)          # (N,)
        cd = jax.lax.rsqrt(deg_in + eps)           # (N,)
        src_pad = jnp.pad(src, (0, pad))
        coef = jnp.take(cs, src_pad) * jnp.take(cd, dst_pad)   # (total,)
    else:  # 'right'
        cd = 1.0 / (deg_in + eps)                  # (N,)
        coef = jnp.take(cd, dst_pad)               # (total,)

    coef_t = coef.reshape(rows_pad, _LANES)
    ew_t = jnp.pad(ew, (0, pad)).reshape(rows_pad, _LANES)  # padded weights = 0

    # ---- Pallas streaming apply ----------------------------------------------
    block = pl.BlockSpec((tile_rows, _LANES), lambda i: (i, 0))
    out2d = pl.pallas_call(
        _apply_coef_kernel,
        out_shape=jax.ShapeDtypeStruct((rows_pad, _LANES), jnp.float32),
        grid=grid,
        in_specs=[block, block],
        out_specs=block,
        compiler_params=pltpu.CompilerParams(
            dimension_semantics=("parallel",),
            vmem_limit_bytes=32 * 1024 * 1024),
    )(coef_t, ew_t)

    out_flat = out2d.reshape(-1)
    if return_padded:
        return out_flat  # (rows_pad*_LANES,); first E entries are valid
    # TODO(synk): this slice costs one extra HBM pass; consumers that accept
    # the padded layout should pass return_padded=True instead.
    return out_flat[:E]


def _reference(src, dst, ew, num_nodes, norm='both', eps=0.0):
    """Pure-JAX reference (mirrors the DGL update_all / apply_edges semantics)."""
    ew = ew.astype(jnp.float32)
    if norm == 'both':
        ns = (jax.ops.segment_sum(ew, src, num_nodes) + eps) ** -0.5
    else:
        ns = jnp.ones((num_nodes,), jnp.float32)
    if norm != 'none':
        deg_in = jax.ops.segment_sum(ew, dst, num_nodes) + eps
        nd = deg_in ** -0.5 if norm == 'both' else 1.0 / deg_in
    else:
        nd = jnp.ones((num_nodes,), jnp.float32)
    return ns[src] * nd[dst] * ew


if __name__ == "__main__":
    # Small graph (same topology as the DGL docstring example, with self-loops).
    num_nodes = 6
    src = jnp.array([0, 1, 2, 3, 2, 5, 0, 1, 2, 3, 4, 5], dtype=jnp.int32)
    dst = jnp.array([1, 2, 3, 4, 0, 3, 0, 1, 2, 3, 4, 5], dtype=jnp.int32)

    key = jax.random.PRNGKey(0)
    kw0, ks2, kd2, kw2 = jax.random.split(key, 4)
    # Strictly positive weights (required by norm='both', as the module enforces).
    edge_weight = jax.random.uniform(
        kw0, (src.shape[0],), dtype=jnp.float32, minval=0.1, maxval=1.0)

    out = jax.block_until_ready(
        edge_weight_norm(src, dst, edge_weight, num_nodes, norm='both', eps=0.0))
    ref = _reference(src, dst, edge_weight, num_nodes, norm='both', eps=0.0)
    assert out.shape == edge_weight.shape
    assert jnp.allclose(out, ref, rtol=1e-4, atol=1e-6), (out, ref)

    # Also exercise the 'right' normalization path.
    out_r = jax.block_until_ready(
        edge_weight_norm(src, dst, edge_weight, num_nodes, norm='right', eps=0.0))
    ref_r = _reference(src, dst, edge_weight, num_nodes, norm='right', eps=0.0)
    assert jnp.allclose(out_r, ref_r, rtol=1e-4, atol=1e-6), (out_r, ref_r)

    # Larger random graph: exercises padding, multi-step grid and nonzero eps.
    N2, E2 = 512, 20000
    src2 = jax.random.randint(ks2, (E2,), 0, N2, dtype=jnp.int32)
    dst2 = jax.random.randint(kd2, (E2,), 0, N2, dtype=jnp.int32)
    ew2 = jax.random.uniform(kw2, (E2,), dtype=jnp.float32, minval=0.1, maxval=1.0)
    out2 = jax.block_until_ready(
        edge_weight_norm(src2, dst2, ew2, N2, norm='both', eps=1e-3))
    ref2 = _reference(src2, dst2, ew2, N2, norm='both', eps=1e-3)
    assert jnp.allclose(out2, ref2, rtol=1e-4, atol=1e-6), "large-graph mismatch"

    # Padded-output path (skips the final slice) must agree on the valid prefix.
    out2_pad = jax.block_until_ready(
        edge_weight_norm(src2, dst2, ew2, N2, norm='both', eps=1e-3,
                         return_padded=True))
    assert jnp.allclose(out2_pad[:E2], ref2, rtol=1e-4, atol=1e-6)

    print("KERNEL_OK")
</pallas_src>

<mosaic_0001>
module attributes {stable_mosaic.version = 11 : i64} {
  func.func @_apply_coef_kernel(%arg0: i32, %arg1: memref<8x512xf32, #tpu.memory_space<vmem>>, %arg2: memref<8x512xf32, #tpu.memory_space<vmem>>, %arg3: memref<8x512xf32, #tpu.memory_space<vmem>>) attributes {dimension_semantics = [#tpu.dimension_semantics<parallel>], iteration_bounds = array<i64: 1>, scalar_prefetch = 0 : i64, scratch_operands = 0 : i64, tpu.core_type = #tpu.core_type<tc>, window_params = [{transform_indices = @transform_0, window_bounds = array<i64: 8, 512>}, {transform_indices = @transform_1, window_bounds = array<i64: 8, 512>}, {transform_indices = @transform_2, window_bounds = array<i64: 8, 512>}]} {
    %c0 = arith.constant 0 : index
    %c0_0 = arith.constant 0 : index
    %0 = vector.load %arg1[%c0, %c0_0] : memref<8x512xf32, #tpu.memory_space<vmem>>, vector<8x512xf32>
    %c0_1 = arith.constant 0 : index
    %c0_2 = arith.constant 0 : index
    %1 = vector.load %arg2[%c0_1, %c0_2] : memref<8x512xf32, #tpu.memory_space<vmem>>, vector<8x512xf32>
    %2 = arith.mulf %0, %1 : vector<8x512xf32>
    %c0_3 = arith.constant 0 : index
    %c0_4 = arith.constant 0 : index
    %3 = vector.load %arg3[%c0_3, %c0_4] : memref<8x512xf32, #tpu.memory_space<vmem>>, vector<8x512xf32>
    tpu.vector_store %arg3[%c0_3, %c0_4], %2 {strides = array<i32>} : memref<8x512xf32, #tpu.memory_space<vmem>>, vector<8x512xf32>,
    return
  }
  func.func @transform_0(%arg0: i32) -> (i32, i32) {
    %c0_i32 = arith.constant 0 : i32
    %c0_i32_0 = arith.constant 0 : i32
    return %arg0, %c0_i32 : i32, i32
  }
  func.func @transform_1(%arg0: i32) -> (i32, i32) {
    %c0_i32 = arith.constant 0 : i32
    %c0_i32_0 = arith.constant 0 : i32
    return %arg0, %c0_i32 : i32, i32
  }
  func.func @transform_2(%arg0: i32) -> (i32, i32) {
    %c0_i32 = arith.constant 0 : i32
    %c0_i32_0 = arith.constant 0 : i32
    return %arg0, %c0_i32 : i32, i32
  }
}

</mosaic_0001>

<bundles_post_ra>
// kernel: tpu_custom_call.1
= control target key start
LH: loop header
LB: loop body
LE: loop exit
PB: predicated region body
PF: predicated region fallthrough
CT: control target
= control target key end

     0   :  { %7 = vsyncpa [#allocation3], 0  ;;  %s197_s0 = inlined_call_operand.hbm [shape: f32[8,512], index: 0, kind: input, shape index: {}]   ;;  %s198_s1 = inlined_call_operand.hbm [shape: f32[8,512], index: 1, kind: input, shape index: {}]   ;;  %s199_s2 = inlined_call_operand.hbm [shape: f32[8,512], index: 2, kind: output, shape index: {}]  }
   0x1   :  { %8 = vsyncpa [#allocation6], 0 }
   0x2   :  { %9 = vsyncpa [#allocation4], 0  ;;  %s143_s9 = smov [#allocation2]   ;;  %s144_s11 = smov [#allocation5]  }
   0x3   :  { %s16_s10 = sshll.u32 %s143_s9, 4  ;;  %s26_s12 = sshll.u32 %s144_s11, 4  ;;  %s17_s10 = int_to_ptr.vmem [resolvable:$true] %s16_s10  ;;  %s27_s12 = int_to_ptr.vmem [resolvable:$true] %s26_s12 }
   0x4   :  { %s71_s15 = scalar_lea.hbm %s197_s0, 512 }
   0x5   :  { %p72_p0 = scmp.ne.s32.totalorder %s197_s0, %s71_s15  ;;  %p75_p1 = scmp.lt.u32.totalorder %s71_s15, %s197_s0 }
   0x7   :  { %p77_p2 = pnand %p75_p1, %p72_p0 }
   0x9   :  { %80 = shalt.err (!%p77_p2)
}
   0xa   :  { %s81_s20 = scalar_lea.vmem %s17_s10, 512  ;;  %p86_p4 = scmp.lt.s32.totalorder %s17_s10, %s17_s10 }
   0xb   :  { %p82_p3 = scmp.ne.s32.totalorder %s17_s10, %s81_s20  ;;  %p87_p5 = scmp.lt.s32.totalorder %s81_s20, %s81_s20 }
   0xd   :  { %p88_p6 = por %p87_p5, %p86_p4 }
   0xf   :  { %p89_p7 = pnand %p88_p6, %p82_p3 }
  0x11   :  { %92 = shalt.err (!%p89_p7)
}
  0x12   :  { %19 = dma.hbm_to_vmem [thread:$0]  %s197_s0, 512, %s17_s10, [#allocation3]  }
  0x13   :  { %s93_s25 = scalar_lea.hbm %s198_s1, 512 }
  0x14   :  { %p94_p8 = scmp.ne.s32.totalorder %s198_s1, %s93_s25  ;;  %p97_p9 = scmp.lt.u32.totalorder %s93_s25, %s198_s1 }
  0x16   :  { %p99_p10 = pnand %p97_p9, %p94_p8 }
  0x18   :  { %102 = shalt.err (!%p99_p10)
}
  0x19   :  { %s103_s30 = scalar_lea.vmem %s27_s12, 512  ;;  %p108_p12 = scmp.lt.s32.totalorder %s27_s12, %s27_s12 }
  0x1a   :  { %p104_p11 = scmp.ne.s32.totalorder %s27_s12, %s103_s30  ;;  %p109_p13 = scmp.lt.s32.totalorder %s103_s30, %s103_s30 }
  0x1c   :  { %p110_p0 = por %p109_p13, %p108_p12 }
  0x1e   :  { %p111_p1 = pnand %p110_p0, %p104_p11 }
  0x20   :  { %114 = shalt.err (!%p111_p1)
}
  0x21   :  { %29 = dma.hbm_to_vmem [thread:$0]  %s198_s1, 512, %s27_s12, [#allocation6]  }
  0x22   :  { %137 = dma.done.wait [#allocation3], 512  }
  0x23   :  { %138 = vsyncadd [#allocation3], 4294966784 }
  0x24   :  { %139 = dma.done.wait [#allocation6], 512  }
  0x25   :  { %140 = vsyncadd [#allocation6], 4294966784  ;;  %v36_v0 = vld [vmem:[#allocation2] sm:$0xff]  ;;  %v37_v2 = vld [vmem:[#allocation2 + $0x8] sm:$0xff]  ;;  %s145_s4 = smov [#allocation7]  }
  0x26   :  { %v40_v1 = vld [vmem:[#allocation5] sm:$0xff]  ;;  %s58_s5 = sshll.u32 %s145_s4, 4  ;;  %v41_v4 = vld [vmem:[#allocation5 + $0x8] sm:$0xff]  ;;  %v38_v5 = vld [vmem:[#allocation2 + $0x10] sm:$0xff]  ;;  %s59_s5 = int_to_ptr.vmem [resolvable:$true] %s58_s5 }
  0x27   :  { %v44_v3 = vmul.f32 %v40_v1, %v36_v0  ;;  %v42_v6 = vld [vmem:[#allocation5 + $0x10] sm:$0xff]  ;;  %v45_v7 = vmul.f32 %v41_v4, %v37_v2  ;;  %v39_v9 = vld [vmem:[#allocation2 + $0x18] sm:$0xff]  ;;  %s115_s1 = scalar_lea.vmem %s59_s5, 512  ;;  %p120_p3 = scmp.lt.s32.totalorder %s59_s5, %s59_s5 }
  0x28   :  { %v46_v8 = vmul.f32 %v42_v6, %v38_v5  ;;  %v43_v10 = vld [vmem:[#allocation5 + $0x18] sm:$0xff]  ;;  %p116_p2 = scmp.ne.s32.totalorder %s59_s5, %s115_s1  ;;  %p121_p4 = scmp.lt.s32.totalorder %s115_s1, %s115_s1 }
  0x29   :  { %48 = vst [vmem:[#allocation7] sm:$0xff] %v44_v3  ;;  %v47_v11 = vmul.f32 %v43_v10, %v39_v9  ;;  %49 = vst [vmem:[#allocation7 + $0x8] sm:$0xff] %v45_v7 }
  0x2a   :  { %50 = vst [vmem:[#allocation7 + $0x10] sm:$0xff] %v46_v8  ;;  %p122_p5 = por %p121_p4, %p120_p3 }
  0x2b   :  { %51 = vst [vmem:[#allocation7 + $0x18] sm:$0xff] %v47_v11 }
  0x2c   :  { %p123_p6 = pnand %p122_p5, %p116_p2 }
  0x2e   :  { %126 = shalt.err (!%p123_p6)
}
  0x2f   :  { %s127_s8 = scalar_lea.hbm %s199_s2, 512 }
  0x30   :  { %p128_p7 = scmp.ne.s32.totalorder %s199_s2, %s127_s8  ;;  %p131_p8 = scmp.lt.u32.totalorder %s127_s8, %s199_s2 }
  0x32   :  { %p133_p9 = pnand %p131_p8, %p128_p7 }
  0x34   :  { %136 = shalt.err (!%p133_p9)
}
  0x35   :  { %61 = dma.vmem_to_hbm [thread:$0]  %s59_s5, 512, %s199_s2, [#allocation4]  }
  0x36   :  { %141 = dma.done.wait [#allocation4], 512  }
  0x37   :  { %142 = vsyncadd [#allocation4], 4294966784 }
  0x38   :  { %65 = vsyncpa [#allocation3], 1 }
  0x39   :  { %66 = vsyncpa [#allocation6], 1 }
  0x3a   :  { %67 = vsyncpa [#allocation4], 1 }

</bundles_post_ra>
